<compile_context>
chip_gen: v6e
topology: v6e:2x2x1
jax: 0.10.0
libtpu: 0.0.40
codegen_flags: <defaults>
</compile_context>

<pallas_src>
import jax
import jax.numpy as jnp
from jax.experimental import pallas as pl
from jax.experimental.pallas import tpu as pltpu


def _gem_heat_kernel(w_ref, x_ref, o_ref):
    # w_ref: (D, 1)       softmax(p) column, precomputed in the wrapper
    # x_ref: (TILE_R, D)  one row tile of the flattened (B*C, D) input
    # o_ref: (TILE_R, 1)
    # Natural [M,K] @ [K,N]: no transpose of the big x tile, f32 accumulation.
    y = jnp.dot(x_ref[...], w_ref[...], preferred_element_type=jnp.float32)
    o_ref[...] = y.astype(o_ref.dtype)


def _vmem_capacity_bytes():
    """Physical VMEM capacity, with a conservative (v7x-sized) fallback."""
    try:
        info = pltpu.get_tpu_info()
        cap = getattr(info, "vmem_capacity_bytes", None)
        if cap:
            return int(cap)
    except Exception:
        pass
    return 64 * 1024 * 1024


def _choose_tile_r(num_rows, d, itemsize, vmem_cap):
    """Pick the row-tile size for streaming x.

    Generation/dtype aware: the double-buffered x tile gets ~3/8 of physical
    VMEM (=> ~24 MiB on v7x, capped at 48 MiB on v5e/v6e), rows are a multiple
    of 128, and for large problems we keep >= 4 tiles so the "parallel" grid
    axis can shard across v7x's two TensorCores and still pipeline (but never
    shrink below 1024 rows just for tile count).
    """
    x_budget = min((vmem_cap * 3) // 8, 48 * 1024 * 1024)
    max_rows = max(128, x_budget // (2 * d * itemsize))
    tile = max(128, min((max_rows // 128) * 128, 8192))
    rows128 = pl.cdiv(num_rows, 128) * 128
    tile = min(tile, rows128)
    if pl.cdiv(num_rows, tile) < 4:
        quarter = pl.cdiv(pl.cdiv(num_rows, 4), 128) * 128
        tile = min(tile, max(quarter, min(1024, rows128)))
    return tile


def gem_heat(x, p):
    """Gem_heat forward.  x: (B, C, D) float, p: (D,) float  ->  (B, C)."""
    B, C, D = x.shape
    R = B * C
    itemsize = jnp.dtype(x.dtype).itemsize

    # Hoisted softmax over p (a (D,)-sized op; done once, in f32), as a column.
    w = jax.nn.softmax(p.astype(jnp.float32)).astype(x.dtype).reshape(D, 1)

    # No padding copy: reshape is free for contiguous x; the last grid block
    # is ragged (see module docstring for the per-row-reduction invariant).
    x2 = x.reshape(R, D)

    vmem_cap = _vmem_capacity_bytes()
    tile_r = _choose_tile_r(R, D, itemsize, vmem_cap)
    n_tiles = pl.cdiv(R, tile_r)

    # Scoped-VMEM budget: x double buffer + output double buffer (the
    # (tile_r, 1) block is lane-padded to 128 in VMEM) + w, with headroom,
    # clamped to ~3/4 of physical VMEM.
    vmem_bytes = 2 * tile_r * D * itemsize          # x double buffer
    vmem_bytes += 2 * tile_r * 128 * itemsize       # out double buffer (padded)
    vmem_bytes += 2 * D * itemsize                  # w
    vmem_bytes = int(vmem_bytes * 1.25) + (2 << 20)
    vmem_bytes = max(vmem_bytes, 8 * 1024 * 1024)
    vmem_bytes = min(vmem_bytes, (vmem_cap * 3) // 4)

    out = pl.pallas_call(
        _gem_heat_kernel,
        out_shape=jax.ShapeDtypeStruct((R, 1), x.dtype),
        grid=(n_tiles,),
        in_specs=[
            pl.BlockSpec((D, 1), lambda i: (0, 0)),        # w: invariant block
            pl.BlockSpec((tile_r, D), lambda i: (i, 0)),   # x: streamed row tiles
        ],
        out_specs=pl.BlockSpec((tile_r, 1), lambda i: (i, 0)),
        compiler_params=pltpu.CompilerParams(
            dimension_semantics=("parallel",),
            vmem_limit_bytes=int(vmem_bytes),
        ),
        cost_estimate=pl.CostEstimate(
            flops=2 * R * D,
            transcendentals=0,
            bytes_accessed=(R * D + D + R) * itemsize,
        ),
    )(w, x2)

    return out.reshape(B, C)


if __name__ == "__main__":
    # Small shapes consistent with the forward: x is (B, C, dim)
    B, C, D = 2, 4, 32

    # Deterministic parameter init, matching nn.Parameter(torch.ones(dim) * p), p=3
    p_param = jnp.ones((D,), dtype=jnp.float32) * 3.0

    key = jax.random.PRNGKey(0)
    x = jax.random.normal(key, (B, C, D), dtype=jnp.float32)

    out = jax.block_until_ready(gem_heat(x, p_param))

    # Pure-JAX reference check
    w_ref = jax.nn.softmax(p_param)
    ref = jnp.einsum("bcd,d->bc", x, w_ref)
    assert out.shape == (B, C)
    assert jnp.allclose(out, ref, atol=1e-5, rtol=1e-5)

    print("KERNEL_OK")
</pallas_src>

<mosaic_0001>
module attributes {stable_mosaic.version = 11 : i64} {
  func.func @_gem_heat_kernel(%arg0: i32, %arg1: memref<32x1xf32, #tpu.memory_space<vmem>>, %arg2: memref<128x32xf32, #tpu.memory_space<vmem>>, %arg3: memref<128x1xf32, #tpu.memory_space<vmem>>) attributes {dimension_semantics = [#tpu.dimension_semantics<parallel>], iteration_bounds = array<i64: 1>, scalar_prefetch = 0 : i64, scratch_operands = 0 : i64, tpu.core_type = #tpu.core_type<tc>, window_params = [{pipeline_mode = #tpu.pipeline_mode<synchronous>, transform_indices = @transform_0, window_bounds = array<i64: 32, 1>}, {transform_indices = @transform_1, window_bounds = array<i64: 128, 32>}, {transform_indices = @transform_2, window_bounds = array<i64: 128, 1>}]} {
    %c0 = arith.constant 0 : index
    %c0_0 = arith.constant 0 : index
    %0 = vector.load %arg2[%c0, %c0_0] : memref<128x32xf32, #tpu.memory_space<vmem>>, vector<128x32xf32>
    %c0_1 = arith.constant 0 : index
    %c0_2 = arith.constant 0 : index
    %1 = vector.load %arg1[%c0_1, %c0_2] : memref<32x1xf32, #tpu.memory_space<vmem>>, vector<32x1xf32>
    %cst = arith.constant dense<0.000000e+00> : vector<128x1xf32>
    %2 = tpu.matmul %0, %1, %cst {dimension_numbers = #tpu.dot_dimension_numbers<[1], [0], [0], [1], [0, 0, 1, 1], [], []>} : vector<128x32xf32>, vector<32x1xf32>, vector<128x1xf32> -> vector<128x1xf32>
    %c0_3 = arith.constant 0 : index
    %c0_4 = arith.constant 0 : index
    %3 = vector.load %arg3[%c0_3, %c0_4] : memref<128x1xf32, #tpu.memory_space<vmem>>, vector<128x1xf32>
    tpu.vector_store %arg3[%c0_3, %c0_4], %2 {strides = array<i32>} : memref<128x1xf32, #tpu.memory_space<vmem>>, vector<128x1xf32>,
    return
  }
  func.func @transform_0(%arg0: i32) -> (i32, i32) {
    %c0_i32 = arith.constant 0 : i32
    %c0_i32_0 = arith.constant 0 : i32
    %c0_i32_1 = arith.constant 0 : i32
    return %c0_i32, %c0_i32_0 : i32, i32
  }
  func.func @transform_1(%arg0: i32) -> (i32, i32) {
    %c0_i32 = arith.constant 0 : i32
    %c0_i32_0 = arith.constant 0 : i32
    return %arg0, %c0_i32 : i32, i32
  }
  func.func @transform_2(%arg0: i32) -> (i32, i32) {
    %c0_i32 = arith.constant 0 : i32
    %c0_i32_0 = arith.constant 0 : i32
    return %arg0, %c0_i32 : i32, i32
  }
}

</mosaic_0001>

<bundles_post_ra>
// kernel: tpu_custom_call.1
= control target key start
LH: loop header
LB: loop body
LE: loop exit
PB: predicated region body
PF: predicated region fallthrough
CT: control target
= control target key end

     0   :  { %vm31_vm0 = vcmask 261120   ;;  %vm225_vm1 = vcmask 7168   ;;  %s453_s0 = inlined_call_operand.vmem [shape: f32[32,1], index: 0, kind: input, shape index: {}]   ;;  %s454_s1 = inlined_call_operand.vmem [shape: f32[8,32], index: 1, kind: input, shape index: {}]   ;;  %s455_s2 = inlined_call_operand.vmem [shape: f32[8,1], index: 2, kind: output, shape index: {}]  }
   0x1   :  { %v30_v0 = vld [vmem:[%s453_s0 + $0x18] sm:$0xff]  ;;  %v29_v1 = vld [vmem:[%s453_s0 + $0x10] sm:$0xff]  ;;  %v28_v2 = vld [vmem:[%s453_s0 + $0x8] sm:$0xff] }
   0x2   :  { %319 = vmatprep.subr.mxu0 %v30_v0  ;;  %351 = vmatprep.subr.mxu1 %v30_v0  ;;  %v27_v3 = vld [vmem:[%s453_s0] sm:$0xff]  ;;  %v12_v6 = vld [vmem:[%s454_s1 + $0x8] sm:$0xff]  ;;  %v13_v8 = vld [vmem:[%s454_s1 + $0x10] sm:$0xff] }
   0x3   :  { %320 = vmatpush3.msra.mxu0 %v30_v0  ;;  %355 = vmatpush3.msra.mxu1 %v30_v0  ;;  %v11_v4 = vld [vmem:[%s454_s1] sm:$0xff]  ;;  %v20_v7 = vld [vmem:[%s454_s1 + $0x48] sm:$0xff]  ;;  %v21_v9 = vld [vmem:[%s454_s1 + $0x50] sm:$0xff] }
   0x4   :  { %321 = vmatprep.subr.mxu0 %v29_v1  ;;  %352 = vmatprep.subr.mxu1 %v29_v1  ;;  %v19_v5 = vld [vmem:[%s454_s1 + $0x40] sm:$0xff]  ;;  %v14_v10 = vld [vmem:[%s454_s1 + $0x18] sm:$0xff]  ;;  %v16_v14 = vld [vmem:[%s454_s1 + $0x28] sm:$0xff] }
   0x5   :  { %322 = vmatpush3.msra.mxu0 %v29_v1  ;;  %356 = vmatpush3.msra.mxu1 %v29_v1  ;;  %v22_v11 = vld [vmem:[%s454_s1 + $0x58] sm:$0xff]  ;;  %v15_v12 = vld [vmem:[%s454_s1 + $0x20] sm:$0xff]  ;;  %v24_v15 = vld [vmem:[%s454_s1 + $0x68] sm:$0xff] }
   0x6   :  { %323 = vmatprep.subr.mxu0 %v28_v2  ;;  %353 = vmatprep.subr.mxu1 %v28_v2  ;;  %v23_v13 = vld [vmem:[%s454_s1 + $0x60] sm:$0xff]  ;;  %v17_v16 = vld [vmem:[%s454_s1 + $0x30] sm:$0xff]  ;;  %v18_v18 = vld [vmem:[%s454_s1 + $0x38] sm:$0xff] }
   0x7   :  { %324 = vmatpush3.msra.mxu0 %v28_v2  ;;  %357 = vmatpush3.msra.mxu1 %v28_v2  ;;  %v25_v17 = vld [vmem:[%s454_s1 + $0x70] sm:$0xff]  ;;  %v26_v19 = vld [vmem:[%s454_s1 + $0x78] sm:$0xff] }
   0x8   :  { %325 = vmatprep.subr.mxu0 %v27_v3  ;;  %354 = vmatprep.subr.mxu1 %v27_v3 }
   0x9   :  { %326 = vmatpush3.msra.mxu0 %v27_v3  ;;  %358 = vmatpush3.msra.mxu1 %v27_v3 }
   0xa   :  { %327 = vmatprep.mubr.msk.f32.mxu0 %vm31_vm0, %v11_v4  ;;  %339 = vmatprep.mubr.msk.f32.mxu1 %vm31_vm0, %v19_v5 }
   0xb   :  { %328 = vmatmul.mubr.msk.f32.vlgmr.msra.gmra.mxu0 %vm31_vm0, %v12_v6  ;;  %340 = vmatmul.mubr.msk.f32.vlgmr.msra.gmra.mxu1 %vm31_vm0, %v20_v7 }
   0xc   :  { %330 = vmatprep.mubr.msk.f32.mxu0 %vm31_vm0, %v13_v8  ;;  %342 = vmatprep.mubr.msk.f32.mxu1 %vm31_vm0, %v21_v9 }
   0xf   :  { %331 = vmatmul.mubr.msk.f32.gmra.mxu0 %vm31_vm0, %v14_v10  ;;  %343 = vmatmul.mubr.msk.f32.gmra.mxu1 %vm31_vm0, %v22_v11 }
  0x10   :  { %333 = vmatprep.mubr.msk.f32.mxu0 %vm31_vm0, %v15_v12  ;;  %345 = vmatprep.mubr.msk.f32.mxu1 %vm31_vm0, %v23_v13 }
  0x13   :  { %334 = vmatmul.mubr.msk.f32.gmra.mxu0 %vm31_vm0, %v16_v14  ;;  %346 = vmatmul.mubr.msk.f32.gmra.mxu1 %vm31_vm0, %v24_v15 }
  0x14   :  { %336 = vmatprep.mubr.msk.f32.mxu0 %vm31_vm0, %v17_v16  ;;  %348 = vmatprep.mubr.msk.f32.mxu1 %vm31_vm0, %v25_v17 }
  0x17   :  { %337 = vmatmul.mubr.msk.f32.gmra.mxu0 %vm31_vm0, %v18_v18  ;;  %349 = vmatmul.mubr.msk.f32.gmra.mxu1 %vm31_vm0, %v26_v19 }
  0xcb   :  { %v329_v20 = vpop.f32.mrf.mxu0  ;;  %v341_v21 = vpop.f32.mrf.mxu1 }
  0xcd   :  { %v146_v22 = vpop.f32.mrf.mxu0  ;;  %v186_v23 = vpop.f32.mrf.mxu1 }
  0xce   :  { %226 = vst.msk [vmem:[#allocation2] sm:$0xff] %vm225_vm1, %v146_v22 }
  0xcf   :  { %v332_v24 = vpop.f32.mrf.mxu0  ;;  %v344_v25 = vpop.f32.mrf.mxu1 }
  0xd1   :  { %v156_v26 = vpop.f32.mrf.mxu0  ;;  %v196_v27 = vpop.f32.mrf.mxu1 }
  0xd3   :  { %v335_v28 = vpop.f32.mrf.mxu0  ;;  %v347_v29 = vpop.f32.mrf.mxu1 }
  0xd5   :  { %v272_v30 = vld [vmem:[#allocation2] sm:$0xff]  ;;  %v166_v31 = vpop.f32.mrf.mxu0  ;;  %v206_v32 = vpop.f32.mrf.mxu1 }
  0xd6   :  { %273 = vst [vmem:[%s455_s2] sm:$0xff] %v272_v30 }
  0xd7   :  { %v338_v33 = vpop.f32.mrf.mxu0  ;;  %v350_v34 = vpop.f32.mrf.mxu1 }
  0xd9   :  { %v176_v35 = vpop.f32.mrf.mxu0  ;;  %v216_v36 = vpop.f32.mrf.mxu1 }

</bundles_post_ra>
